<compile_context>
chip_gen: v7x
topology: tpu7x:2x2x1
jax: 0.10.0
libtpu: 0.0.40
codegen_flags: <defaults>
</compile_context>

<pallas_src>
import functools
import math

import jax
import jax.numpy as jnp
from jax.experimental import pallas as pl
from jax.experimental.pallas import tpu as pltpu

KERNEL_SIZE = 7
PAD = 3  # kernel_size=7, stride=1, padding=3 -> same output length


def avg7_pool1d_kernel(x_ref, o_ref, *, L):
    """One (TR, W) tile of AvgPool1d(7, stride=1, pad=3, count_include_pad=False).

    W = G*L: each tile row holds G logical length-L rows packed back-to-back on
    the lane axis. The 7-tap window sum is built from circular lane rotations
    (XLU slot, cheap) plus narrow (1, W) validity masks computed from the
    column-within-row index (col % L); the masks simultaneously implement the
    "same" padding edges and stop taps from leaking across packed-row
    boundaries. The divisor is column-only, so it is hoisted out of the tap
    loop and applied once as a (1, W) reciprocal row.
    """
    x = x_ref[...].astype(jnp.float32)
    _, W = x.shape

    # Column index inside each logical length-L row, as a (1, W) row.
    # Everything column-dependent stays 1-row and broadcasts over sublanes.
    col = jax.lax.broadcasted_iota(jnp.int32, (1, W), 1)
    if W != L:
        col = col % L

    # 7-tap sum. Rotation wraps out-of-range taps (row edges / packed-row
    # boundaries) to positions the (1, W) validity mask zeroes out. The center
    # tap needs no mask.
    acc = x
    for d in range(-PAD, PAD + 1):
        if d == 0:
            continue
        shifted = pltpu.roll(x, shift=(-d) % W, axis=1)  # shifted[p] = x[p + d] (circular)
        valid = (col >= -d) if d < 0 else (col < L - d)
        acc = acc + jnp.where(valid, shifted, 0.0)

    # count_include_pad=False -> divide by the number of valid (non-pad) taps.
    # Column-only, exact division on a single (1, W) row (cheap; keeps the
    # 1e-5 accuracy that an approx reciprocal would not).
    lo = jnp.maximum(col - PAD, 0)
    hi = jnp.minimum(col + PAD, L - 1)
    inv_cnt = 1.0 / (hi - lo + 1).astype(jnp.float32)

    o_ref[...] = (acc * inv_cnt).astype(o_ref.dtype)


def _round_up(v, m):
    return (v + m - 1) // m * m


def avg7_pooling1d(x, *, row_tile=None):
    """x: (N, C, L) -> (N, C, L); same semantics as the PyTorch Avg7Pooling1d."""
    N, C, L = x.shape
    R = N * C

    # Pack G logical rows per lane-row so the lane extent is >= 128 and (when
    # cheaply possible) a multiple of 128 -> full vregs, unmasked vst.
    if L < 128:
        G = 128 // math.gcd(L, 128)   # smallest G with (G*L) % 128 == 0
        if G > 32:                    # awkward (e.g. odd) L: bound row padding
            G = -(-128 // L)          # ceil(128 / L): still >= 128 lanes
    else:
        G = 1
    W = G * L

    Rg = -(-R // G)  # packed rows needed

    # Row tile: keep the FULL W axis in every block (required for the circular
    # roll trick) and tile over packed rows. Target ~2 MiB f32 per buffer so
    # input + output double-buffering plus f32 temporaries stay well inside the
    # default scoped VMEM on every generation.
    # TODO(synk): very large L (block row > VMEM) would need an L-tiled variant
    # with halo exchange; not needed for this module's shapes.
    if row_tile is None:
        target_elems = 512 * 1024
        row_tile = max(8, min(1024, (target_elems // max(W, 1)) // 8 * 8))
    tr = min(row_tile, _round_up(Rg, 8))

    # Pad rows so packing and the grid divide evenly; padded rows compute
    # harmless zeros (divisor is always >= 1, so no NaNs) and are sliced off.
    Rgp = _round_up(Rg, tr)
    Rp = Rgp * G

    x2d = x.reshape(R, L)
    if Rp != R:
        x2d = jnp.pad(x2d, ((0, Rp - R), (0, 0)))
    x_packed = x2d.reshape(Rgp, W)  # contiguous row-major reshape: no shuffle

    kernel = functools.partial(avg7_pool1d_kernel, L=L)

    out_packed = pl.pallas_call(
        kernel,
        out_shape=jax.ShapeDtypeStruct((Rgp, W), x.dtype),
        grid=(Rgp // tr,),
        in_specs=[pl.BlockSpec((tr, W), lambda i: (i, 0))],
        out_specs=pl.BlockSpec((tr, W), lambda i: (i, 0)),
        compiler_params=pltpu.CompilerParams(
            # Row tiles are independent -> shard grid iterations across both
            # TensorCores on v7x; harmless on v5e/v6e.
            dimension_semantics=("parallel",),
        ),
    )(x_packed)

    out2d = out_packed.reshape(Rp, L)
    if Rp != R:
        out2d = out2d[:R]
    return out2d.reshape(N, C, L)


def _reference(x):
    """Pure-JAX reference (count_include_pad=False)."""
    N, C, L = x.shape
    xp = jnp.pad(x.astype(jnp.float32), ((0, 0), (0, 0), (PAD, PAD)))
    ones = jnp.pad(jnp.ones((N, C, L), jnp.float32), ((0, 0), (0, 0), (PAD, PAD)))
    s = jnp.zeros((N, C, L), jnp.float32)
    c = jnp.zeros((N, C, L), jnp.float32)
    for k in range(KERNEL_SIZE):
        s = s + xp[:, :, k:k + L]
        c = c + ones[:, :, k:k + L]
    return (s / c).astype(x.dtype)


if __name__ == "__main__":
    key = jax.random.PRNGKey(0)

    # Primary small shape consistent with the module's forward.
    N, C, L = 2, 4, 16
    x = jax.random.normal(key, (N, C, L), dtype=jnp.float32)
    out = jax.block_until_ready(avg7_pooling1d(x))
    ref = _reference(x)
    assert out.shape == (N, C, L)
    assert jnp.allclose(out, ref, atol=1e-5, rtol=1e-5), "mismatch vs reference (case 1)"

    # Second small case exercising uneven rows + the col % L packed-mask path.
    key2 = jax.random.PRNGKey(0)
    N2, C2, L2 = 3, 5, 20
    x2 = jax.random.normal(key2, (N2, C2, L2), dtype=jnp.float32)
    out2 = jax.block_until_ready(avg7_pooling1d(x2))
    ref2 = _reference(x2)
    assert out2.shape == (N2, C2, L2)
    assert jnp.allclose(out2, ref2, atol=1e-5, rtol=1e-5), "mismatch vs reference (case 2)"

    print("KERNEL_OK")
</pallas_src>

<mosaic_0001>
module attributes {stable_mosaic.version = 11 : i64} {
  func.func @avg7_pool1d_kernel(%arg0: i32, %arg1: memref<8x128xf32, #tpu.memory_space<vmem>>, %arg2: memref<8x128xf32, #tpu.memory_space<vmem>>) attributes {dimension_semantics = [#tpu.dimension_semantics<parallel>], iteration_bounds = array<i64: 1>, scalar_prefetch = 0 : i64, scratch_operands = 0 : i64, tpu.core_type = #tpu.core_type<tc>, window_params = [{transform_indices = @transform_0, window_bounds = array<i64: 8, 128>}, {transform_indices = @transform_1, window_bounds = array<i64: 8, 128>}]} {
    %c0 = arith.constant 0 : index
    %c0_0 = arith.constant 0 : index
    %0 = vector.load %arg1[%c0, %c0_0] : memref<8x128xf32, #tpu.memory_space<vmem>>, vector<8x128xf32>
    %1 = tpu.iota {dimensions = array<i32: 1>} : vector<1x128xi32>
    %c16_i32 = arith.constant 16 : i32
    %c0_i32 = arith.constant 0 : i32
    %2 = arith.cmpi eq, %c16_i32, %c0_i32 : i32
    %c1_i32 = arith.constant 1 : i32
    %3 = arith.select %2, %c1_i32, %c16_i32 : i32
    %4 = vector.broadcast %3 : i32 to vector<1x128xi32>
    %5 = arith.remsi %1, %4 : vector<1x128xi32>
    %c0_i32_1 = arith.constant 0 : i32
    %6 = vector.broadcast %c0_i32_1 : i32 to vector<1x128xi32>
    %7 = arith.cmpi ne, %5, %6 : vector<1x128xi32>
    %c0_i32_2 = arith.constant 0 : i32
    %8 = vector.broadcast %c0_i32_2 : i32 to vector<1x128xi32>
    %9 = arith.cmpi slt, %5, %8 : vector<1x128xi32>
    %c0_i32_3 = arith.constant 0 : i32
    %10 = arith.cmpi slt, %3, %c0_i32_3 : i32
    %11 = vector.broadcast %10 : i1 to vector<1x128xi1>
    %12 = vector.broadcast %11 : vector<1x128xi1> to vector<1x128xi1>
    %13 = arith.xori %9, %12 : vector<1x128xi1>
    %14 = arith.andi %13, %7 : vector<1x128xi1>
    %15 = vector.broadcast %3 : i32 to vector<1x128xi32>
    %16 = arith.addi %5, %15 : vector<1x128xi32>
    %17 = arith.select %14, %16, %5 : vector<1x128xi1>, vector<1x128xi32>
    %c3_i32 = arith.constant 3 : i32
    %18 = tpu.dynamic_rotate %0 by %c3_i32 dim 1 : vector<8x128xf32>, i32 -> vector<8x128xf32>
    %c3_i32_4 = arith.constant 3 : i32
    %19 = vector.broadcast %c3_i32_4 : i32 to vector<1x128xi32>
    %20 = arith.cmpi sge, %17, %19 : vector<1x128xi32>
    %cst = arith.constant 0.000000e+00 : f32
    %21 = vector.shape_cast %20 : vector<1x128xi1> to vector<1x128xi1>
    %22 = vector.broadcast %21 : vector<1x128xi1> to vector<8x128xi1>
    %23 = vector.broadcast %cst : f32 to vector<8x128xf32>
    %24 = arith.select %22, %18, %23 : vector<8x128xi1>, vector<8x128xf32>
    %25 = arith.addf %0, %24 : vector<8x128xf32>
    %c2_i32 = arith.constant 2 : i32
    %26 = tpu.dynamic_rotate %0 by %c2_i32 dim 1 : vector<8x128xf32>, i32 -> vector<8x128xf32>
    %c2_i32_5 = arith.constant 2 : i32
    %27 = vector.broadcast %c2_i32_5 : i32 to vector<1x128xi32>
    %28 = arith.cmpi sge, %17, %27 : vector<1x128xi32>
    %cst_6 = arith.constant 0.000000e+00 : f32
    %29 = vector.shape_cast %28 : vector<1x128xi1> to vector<1x128xi1>
    %30 = vector.broadcast %29 : vector<1x128xi1> to vector<8x128xi1>
    %31 = vector.broadcast %cst_6 : f32 to vector<8x128xf32>
    %32 = arith.select %30, %26, %31 : vector<8x128xi1>, vector<8x128xf32>
    %33 = arith.addf %25, %32 : vector<8x128xf32>
    %c1_i32_7 = arith.constant 1 : i32
    %34 = tpu.dynamic_rotate %0 by %c1_i32_7 dim 1 : vector<8x128xf32>, i32 -> vector<8x128xf32>
    %c1_i32_8 = arith.constant 1 : i32
    %35 = vector.broadcast %c1_i32_8 : i32 to vector<1x128xi32>
    %36 = arith.cmpi sge, %17, %35 : vector<1x128xi32>
    %cst_9 = arith.constant 0.000000e+00 : f32
    %37 = vector.shape_cast %36 : vector<1x128xi1> to vector<1x128xi1>
    %38 = vector.broadcast %37 : vector<1x128xi1> to vector<8x128xi1>
    %39 = vector.broadcast %cst_9 : f32 to vector<8x128xf32>
    %40 = arith.select %38, %34, %39 : vector<8x128xi1>, vector<8x128xf32>
    %41 = arith.addf %33, %40 : vector<8x128xf32>
    %c127_i32 = arith.constant 127 : i32
    %42 = tpu.dynamic_rotate %0 by %c127_i32 dim 1 : vector<8x128xf32>, i32 -> vector<8x128xf32>
    %c15_i32 = arith.constant 15 : i32
    %43 = vector.broadcast %c15_i32 : i32 to vector<1x128xi32>
    %44 = arith.cmpi slt, %17, %43 : vector<1x128xi32>
    %cst_10 = arith.constant 0.000000e+00 : f32
    %45 = vector.shape_cast %44 : vector<1x128xi1> to vector<1x128xi1>
    %46 = vector.broadcast %45 : vector<1x128xi1> to vector<8x128xi1>
    %47 = vector.broadcast %cst_10 : f32 to vector<8x128xf32>
    %48 = arith.select %46, %42, %47 : vector<8x128xi1>, vector<8x128xf32>
    %49 = arith.addf %41, %48 : vector<8x128xf32>
    %c126_i32 = arith.constant 126 : i32
    %50 = tpu.dynamic_rotate %0 by %c126_i32 dim 1 : vector<8x128xf32>, i32 -> vector<8x128xf32>
    %c14_i32 = arith.constant 14 : i32
    %51 = vector.broadcast %c14_i32 : i32 to vector<1x128xi32>
    %52 = arith.cmpi slt, %17, %51 : vector<1x128xi32>
    %cst_11 = arith.constant 0.000000e+00 : f32
    %53 = vector.shape_cast %52 : vector<1x128xi1> to vector<1x128xi1>
    %54 = vector.broadcast %53 : vector<1x128xi1> to vector<8x128xi1>
    %55 = vector.broadcast %cst_11 : f32 to vector<8x128xf32>
    %56 = arith.select %54, %50, %55 : vector<8x128xi1>, vector<8x128xf32>
    %57 = arith.addf %49, %56 : vector<8x128xf32>
    %c125_i32 = arith.constant 125 : i32
    %58 = tpu.dynamic_rotate %0 by %c125_i32 dim 1 : vector<8x128xf32>, i32 -> vector<8x128xf32>
    %c13_i32 = arith.constant 13 : i32
    %59 = vector.broadcast %c13_i32 : i32 to vector<1x128xi32>
    %60 = arith.cmpi slt, %17, %59 : vector<1x128xi32>
    %cst_12 = arith.constant 0.000000e+00 : f32
    %61 = vector.shape_cast %60 : vector<1x128xi1> to vector<1x128xi1>
    %62 = vector.broadcast %61 : vector<1x128xi1> to vector<8x128xi1>
    %63 = vector.broadcast %cst_12 : f32 to vector<8x128xf32>
    %64 = arith.select %62, %58, %63 : vector<8x128xi1>, vector<8x128xf32>
    %65 = arith.addf %57, %64 : vector<8x128xf32>
    %c3_i32_13 = arith.constant 3 : i32
    %66 = vector.broadcast %c3_i32_13 : i32 to vector<1x128xi32>
    %67 = arith.subi %17, %66 : vector<1x128xi32>
    %c0_i32_14 = arith.constant 0 : i32
    %68 = vector.broadcast %c0_i32_14 : i32 to vector<1x128xi32>
    %69 = arith.maxsi %67, %68 : vector<1x128xi32>
    %c3_i32_15 = arith.constant 3 : i32
    %70 = vector.broadcast %c3_i32_15 : i32 to vector<1x128xi32>
    %71 = arith.addi %17, %70 : vector<1x128xi32>
    %c15_i32_16 = arith.constant 15 : i32
    %72 = vector.broadcast %c15_i32_16 : i32 to vector<1x128xi32>
    %73 = arith.minsi %71, %72 : vector<1x128xi32>
    %74 = arith.subi %73, %69 : vector<1x128xi32>
    %c1_i32_17 = arith.constant 1 : i32
    %75 = vector.broadcast %c1_i32_17 : i32 to vector<1x128xi32>
    %76 = arith.addi %74, %75 : vector<1x128xi32>
    %77 = arith.sitofp %76 : vector<1x128xi32> to vector<1x128xf32>
    %cst_18 = arith.constant 1.000000e+00 : f32
    %78 = vector.broadcast %cst_18 : f32 to vector<1x128xf32>
    %79 = arith.divf %78, %77 : vector<1x128xf32>
    %80 = vector.broadcast %79 : vector<1x128xf32> to vector<8x128xf32>
    %81 = arith.mulf %65, %80 : vector<8x128xf32>
    %c0_19 = arith.constant 0 : index
    %c0_20 = arith.constant 0 : index
    %82 = vector.load %arg2[%c0_19, %c0_20] : memref<8x128xf32, #tpu.memory_space<vmem>>, vector<8x128xf32>
    tpu.vector_store %arg2[%c0_19, %c0_20], %81 {strides = array<i32>} : memref<8x128xf32, #tpu.memory_space<vmem>>, vector<8x128xf32>,
    return
  }
  func.func @transform_0(%arg0: i32) -> (i32, i32) {
    %c0_i32 = arith.constant 0 : i32
    %c0_i32_0 = arith.constant 0 : i32
    return %arg0, %c0_i32 : i32, i32
  }
  func.func @transform_1(%arg0: i32) -> (i32, i32) {
    %c0_i32 = arith.constant 0 : i32
    %c0_i32_0 = arith.constant 0 : i32
    return %arg0, %c0_i32 : i32, i32
  }
}

</mosaic_0001>

<bundles_post_ra>
// kernel: tpu_custom_call.1
= control target key start
LH: loop header
LB: loop body
LE: loop exit
PB: predicated region body
PF: predicated region fallthrough
CT: control target
= control target key end

     0   :  { %6 = vsyncpa [#allocation3], 0  ;;  %s207_s0 = inlined_call_operand.hbm [shape: f32[8,128], index: 0, kind: input, shape index: {}]   ;;  %s208_s1 = inlined_call_operand.hbm [shape: f32[8,128], index: 1, kind: output, shape index: {}]  }
   0x1   :  { %7 = vsyncpa [#allocation4], 0  ;;  %s165_s6 = smov [#allocation2]   ;;  %s117_s10 = scalar_lea.hbm %s207_s0, 128 }
   0x2   :  { %s14_s7 = sshll.u32 %s165_s6, 4  ;;  %p118_p0 = scmp.ne.s32.totalorder %s207_s0, %s117_s10  ;;  %s15_s7 = int_to_ptr.vmem [resolvable:$true] %s14_s7 }
   0x3   :  { %p121_p1 = scmp.lt.u32.totalorder %s117_s10, %s207_s0 }
   0x5   :  { %p123_p2 = pnand %p121_p1, %p118_p0 }
   0x7   :  { %126 = shalt.err (!%p123_p2)
}
   0x8   :  { %s127_s15 = scalar_lea.vmem %s15_s7, 128  ;;  %p132_p4 = scmp.lt.s32.totalorder %s15_s7, %s15_s7 }
   0x9   :  { %p128_p3 = scmp.ne.s32.totalorder %s15_s7, %s127_s15  ;;  %p133_p5 = scmp.lt.s32.totalorder %s127_s15, %s127_s15 }
   0xb   :  { %p134_p6 = por %p133_p5, %p132_p4 }
   0xd   :  { %p135_p7 = pnand %p134_p6, %p128_p3 }
   0xf   :  { %138 = shalt.err (!%p135_p7)
}
  0x10   :  { %17 = dma.hbm_to_vmem [thread:$0]  %s207_s0, 128, %s15_s7, [#allocation3]  }
  0x11   :  { %161 = dma.done.wait [#allocation3], 128  }
  0x12   :  { %162 = vsyncadd [#allocation3], 4294967168  ;;  %v21_v0 = vld [vmem:[#allocation2] sm:$0xff]  ;;  %s166_s18 = smov 3   ;;  %s167_s19 = smov 1   ;;  %v22_v1 = vlaneseq }
  0x13   :  { %36 = vrot.lane.b32.xlu0 %v21_v0, %s166_s18  ;;  %50 = vrot.lane.b32.xlu1 %v21_v0, %s167_s19  ;;  %s168_s20 = smov 2   ;;  %s169_s21 = smov 127  }
  0x14   :  { %s170_s22 = smov 126   ;;  %s171_s23 = smov 125   ;;  %v23_v2 = vand.u32 127, %v22_v1 }
  0x15   :  { %s172_s0 = smov [#allocation5]  }
  0x16   :  { %v28_v3 = vand.u32 15, %v23_v2  ;;  %s97_s24 = sshll.u32 %s172_s0, 4  ;;  %s98_s24 = int_to_ptr.vmem [resolvable:$true] %s97_s24 }
  0x17   :  { %43 = vrot.lane.b32.xlu0 %v21_v0, %s168_s20  ;;  %57 = vrot.lane.b32.xlu1 %v21_v0, %s169_s21  ;;  %s139_s25 = scalar_lea.vmem %s98_s24, 128  ;;  %p144_p9 = scmp.lt.s32.totalorder %s98_s24, %s98_s24 }
  0x18   :  { %v106_v4 = vadd.s32 4294967293, %v28_v3  ;;  %v81_v5 = vadd.s32 3, %v28_v3  ;;  %vm38_vm2 = vcmp.ge.s32.totalorder %v28_v3, 3  ;;  %vm45_vm3 = vcmp.ge.s32.totalorder %v28_v3, 2  ;;  %p140_p8 = scmp.ne.s32.totalorder %s98_s24, %s139_s25  ;;  %p145_p10 = scmp.lt.s32.totalorder %s139_s25, %s139_s25 }
  0x19   :  { %vm52_vm4 = vcmp.ge.s32.totalorder %v28_v3, 1  ;;  %vm59_vm5 = vcmp.lt.s32.totalorder %v28_v3, 15  ;;  %vm66_vm6 = vcmp.lt.s32.totalorder %v28_v3, 14  ;;  %vm73_vm7 = vcmp.lt.s32.totalorder %v28_v3, 13 }
  0x1a   :  { %vm79_vm0 = vcmp.gt.s32.totalorder %v106_v4, 0  ;;  %vm82_vm1 = vcmp.lt.s32.totalorder %v81_v5, 15  ;;  %p146_p11 = por %p145_p10, %p144_p9 }
  0x1b   :  { %64 = vrot.lane.b32.xlu0 %v21_v0, %s170_s22  ;;  %71 = vrot.lane.b32.xlu1 %v21_v0, %s171_s23  ;;  %v80_v6 = vsel %vm79_vm0, %v106_v4, 0  ;;  %v83_v7 = vsel %vm82_vm1, %v81_v5, 15 }
  0x1c   :  { %v84_v8 = vsub.s32 %v83_v7, %v80_v6  ;;  %p147_p12 = pnand %p146_p11, %p140_p8 }
  0x1e   :  { %v85_v9 = vadd.s32 1, %v84_v8 }
  0x20   :  { %v86_v10 = vcvt.s32.f32 %v85_v9 }
  0x22   :  { %115 = vrcp.f32 %v86_v10 }
  0x2c   :  { %v116_v28 = vpop.eup %115 }
  0x85   :  { %v37_v11 = vpop.permute.xlu0 %36  ;;  %v51_v12 = vpop.permute.xlu1 %50 }
  0x86   :  { %v41_v13 = vsel %vm38_vm2, %v37_v11, 0.0  ;;  %v55_v19 = vsel %vm52_vm4, %v51_v12, 0.0 }
  0x87   :  { %v42_v14 = vadd.f32 %v41_v13, %v21_v0 }
  0x89   :  { %v44_v15 = vpop.permute.xlu0 %43  ;;  %v58_v16 = vpop.permute.xlu1 %57 }
  0x8a   :  { %v48_v17 = vsel %vm45_vm3, %v44_v15, 0.0  ;;  %v62_v20 = vsel %vm59_vm5, %v58_v16, 0.0 }
  0x8b   :  { %v49_v18 = vadd.f32 %v48_v17, %v42_v14 }
  0x8d   :  { %v56_v21 = vadd.f32 %v55_v19, %v49_v18  ;;  %v65_v22 = vpop.permute.xlu0 %64  ;;  %v72_v23 = vpop.permute.xlu1 %71 }
  0x8e   :  { %v69_v24 = vsel %vm66_vm6, %v65_v22, 0.0  ;;  %v76_v26 = vsel %vm73_vm7, %v72_v23, 0.0 }
  0x8f   :  { %v63_v25 = vadd.f32 %v62_v20, %v56_v21 }
  0x91   :  { %v70_v27 = vadd.f32 %v69_v24, %v63_v25 }
  0x93   :  { %v77_v29 = vadd.f32 %v76_v26, %v70_v27 }
  0x95   :  { %v89_v30 = vmul.f32 %v116_v28, %v77_v29 }
  0x97   :  { %90 = vst [vmem:[#allocation5] sm:$0xff] %v89_v30 }
  0x98   :  { %150 = shalt.err (!%p147_p12)
}
  0x99   :  { %s151_s28 = scalar_lea.hbm %s208_s1, 128 }
  0x9a   :  { %p152_p13 = scmp.ne.s32.totalorder %s208_s1, %s151_s28  ;;  %p155_p0 = scmp.lt.u32.totalorder %s151_s28, %s208_s1 }
  0x9c   :  { %p157_p1 = pnand %p155_p0, %p152_p13 }
  0x9e   :  { %160 = shalt.err (!%p157_p1)
}
  0x9f   :  { %100 = dma.vmem_to_hbm [thread:$0]  %s98_s24, 128, %s208_s1, [#allocation4]  }
  0xa0   :  { %163 = dma.done.wait [#allocation4], 128  }
  0xa1   :  { %164 = vsyncadd [#allocation4], 4294967168 }
  0xa2   :  { %104 = vsyncpa [#allocation3], 1 }
  0xa3   :  { %105 = vsyncpa [#allocation4], 1 }

</bundles_post_ra>
